<compile_context>
chip_gen: v7x
topology: tpu7x:2x2x1
jax: 0.10.0
libtpu: 0.0.40
codegen_flags: <defaults>
</compile_context>

<pallas_src>
import jax
import jax.numpy as jnp
import numpy as np
from jax.experimental import pallas as pl
from jax.experimental.pallas import tpu as pltpu

MIB = 1024 * 1024


def _round_up(x, m):
    return ((x + m - 1) // m) * m


def _vmem_capacity_bytes(default=128 * MIB):
    try:
        info = pltpu.get_tpu_info()
        return int(getattr(info, "vmem_capacity_bytes", default))
    except Exception:
        return default


def _vmem_limit_bytes():
    cap = _vmem_capacity_bytes()
    # v5e/v6e (128 MiB) -> 64 MiB scoped limit; v7x (64 MiB) -> 32 MiB.
    return int(min(64 * MIB, max(32 * MIB, cap // 2)))


def _divisors_desc(n):
    return [d for d in range(n, 0, -1) if n % d == 0]


def _pick_tiles(N, M, row_in_bytes, row_out_bytes, budget_bytes, target_steps=4):
    """Pick (batch tile Bt, row tile T) for the (N, M) = (batch, Ho*Wo) grid.

    Constraints:
      * T divides M and is a multiple of 8 (sublane aligned) or equals M.
      * Bt divides N.
      * VMEM block bytes (x block + out block) within budget.
      * total grid steps >= min(target_steps, achievable) so the pipeline has
        work and both v7x TensorCores get steps under "parallel" semantics.
    Prefers the biggest block, tie-broken toward a larger spatial tile
    (better DMA contiguity).
    """
    t_cands = [t for t in _divisors_desc(M) if t == M or t % 8 == 0] or [M]
    b_cands = _divisors_desc(N) or [1]

    combos = []
    for T in t_cands:
        for Bt in b_cands:
            blk = Bt * T * (row_in_bytes + row_out_bytes)
            steps = (N // Bt) * (M // T)
            combos.append((Bt, T, blk, steps))

    fits = [c for c in combos if c[2] <= budget_bytes]
    if not fits:
        Bt, T, _, _ = min(combos, key=lambda c: c[2])
        return Bt, T

    max_steps = max(c[3] for c in fits)
    target = min(target_steps, max_steps)
    fits = [c for c in fits if c[3] >= target]
    Bt, T, _, _ = max(fits, key=lambda c: (c[0] * c[1], c[1]))
    return Bt, T


def transition_kernel(x_ref, scale_ref, shift_ref, w_ref, o_ref):
    # x_ref : (Bt, 4, T, C) bf16 -- 4 = the 2x2 pool parities, packed by wrapper
    # scale/shift : (1, C) f32, BN folded, 0.25 pool factor folded in
    # w_ref : (C, Cout) bf16
    # o_ref : (Bt, T, Cout)
    s = scale_ref[...]
    b = shift_ref[...]
    w = w_ref[...]
    bt_tile = o_ref.shape[0]
    for bt in range(bt_tile):  # static unroll; Bt is small (usually 1)
        # Tap-by-tap accumulation keeps the live f32 intermediate at (T, C)
        # instead of materializing the whole (4, T, C) block in f32.
        p = jnp.maximum(x_ref[bt, 0] * s + b, 0.0)
        p = p + jnp.maximum(x_ref[bt, 1] * s + b, 0.0)
        p = p + jnp.maximum(x_ref[bt, 2] * s + b, 0.0)
        p = p + jnp.maximum(x_ref[bt, 3] * s + b, 0.0)
        # 1x1 conv as a channel matmul: bf16 operands, f32 MXU accumulation.
        z = jnp.dot(p.astype(jnp.bfloat16), w, preferred_element_type=jnp.float32)
        o_ref[bt] = z.astype(o_ref.dtype)


def transition_forward(x_nchw, gamma, beta, running_mean, running_var, w_oihw,
                       eps=1e-5, out_layout="NCHW", out_dtype=None):
    N, C, H, W = x_nchw.shape
    Cout = w_oihw.shape[0]
    assert w_oihw.shape[1:] == (C, 1, 1), "1x1 conv, no bias expected"
    assert H % 2 == 0 and W % 2 == 0, "even spatial dims required (see TODO)"
    Ho, Wo = H // 2, W // 2
    M = Ho * Wo
    out_dtype = x_nchw.dtype if out_dtype is None else out_dtype

    # ---- glue (plain JAX): fold BN (+ pool factor), pack pool parities ----
    inv_std = jax.lax.rsqrt(running_var.astype(jnp.float32) + eps)
    scale = (0.25 * gamma.astype(jnp.float32) * inv_std).reshape(1, C)
    shift = (0.25 * (beta.astype(jnp.float32)
                     - running_mean.astype(jnp.float32)
                     * gamma.astype(jnp.float32) * inv_std)).reshape(1, C)
    w = w_oihw.reshape(Cout, C).T.astype(jnp.bfloat16)            # (C, Cout)

    # Single fused HBM pass: NCHW f32 -> (N, 4, Ho*Wo, C) bf16, parity-major.
    # Parity index = 2*(h % 2) + (w % 2); the trailing reshape is a free view.
    x6 = x_nchw.reshape(N, C, Ho, 2, Wo, 2)
    xp = jnp.transpose(x6, (0, 3, 5, 2, 4, 1)).astype(jnp.bfloat16)
    xp = xp.reshape(N, 4, M, C)

    # ---- tiling: generation-aware VMEM budget, keep the grid non-trivial ----
    vmem_limit = _vmem_limit_bytes()
    # VMEM-resident bytes per pooled-output row (lane-rounded, bf16 in, out):
    row_in_bytes = 4 * _round_up(C, 128) * 2
    row_out_bytes = _round_up(Cout, 128) * jnp.dtype(out_dtype).itemsize
    budget = vmem_limit // 6   # block double-buffered -> ~1/3 of the limit
    Bt, T = _pick_tiles(N, M, row_in_bytes, row_out_bytes, budget)
    grid = (N // Bt, M // T)

    out = pl.pallas_call(
        transition_kernel,
        out_shape=jax.ShapeDtypeStruct((N, M, Cout), out_dtype),
        grid_spec=pltpu.PrefetchScalarGridSpec(
            num_scalar_prefetch=0,
            grid=grid,
            in_specs=[
                pl.BlockSpec((Bt, 4, T, C), lambda n, t: (n, 0, t, 0)),
                pl.BlockSpec((1, C), lambda n, t: (0, 0)),
                pl.BlockSpec((1, C), lambda n, t: (0, 0)),
                pl.BlockSpec((C, Cout), lambda n, t: (0, 0)),
            ],
            out_specs=pl.BlockSpec((Bt, T, Cout), lambda n, t: (n, t, 0)),
        ),
        compiler_params=pltpu.CompilerParams(
            dimension_semantics=("parallel", "parallel"),
            vmem_limit_bytes=vmem_limit,
        ),
    )(xp, scale, shift, w)

    out = out.reshape(N, Ho, Wo, Cout)
    if out_layout == "NHWC":
        return out
    return jnp.transpose(out, (0, 3, 1, 2))     # NCHW, like PyTorch


def reference_forward(x, gamma, beta, mean, var, w, eps=1e-5):
    xn = (x - mean[None, :, None, None]) / jnp.sqrt(var[None, :, None, None] + eps)
    xn = xn * gamma[None, :, None, None] + beta[None, :, None, None]
    xr = jnp.maximum(xn, 0.0)
    y = jax.lax.conv_general_dilated(xr, w, (1, 1), 'VALID',
                                     dimension_numbers=('NCHW', 'OIHW', 'NCHW'))
    N, Cout, H, W = y.shape
    return y.reshape(N, Cout, H // 2, 2, W // 2, 2).mean(axis=(3, 5))


if __name__ == "__main__":
    key = jax.random.PRNGKey(0)
    k1, k2, k3, k4, k5, k6 = jax.random.split(key, 6)

    # small shapes consistent with the module: nChannels=4, nOutChannels=2
    N, C, H, W = 2, 4, 16, 16
    Cout = 2

    x = jax.random.normal(k1, (N, C, H, W), dtype=jnp.float32)
    gamma = 1.0 + 0.1 * jax.random.normal(k2, (C,), dtype=jnp.float32)
    beta = 0.1 * jax.random.normal(k3, (C,), dtype=jnp.float32)
    running_mean = 0.1 * jax.random.normal(k4, (C,), dtype=jnp.float32)
    running_var = jax.random.uniform(k5, (C,), dtype=jnp.float32, minval=0.5, maxval=1.5)
    w = jax.random.normal(k6, (Cout, C, 1, 1), dtype=jnp.float32) * (2.0 / C) ** 0.5

    out = transition_forward(x, gamma, beta, running_mean, running_var, w)
    out = jax.block_until_ready(out)

    ref = reference_forward(x, gamma, beta, running_mean, running_var, w)
    # bf16 activations/weights on the MXU with f32 accumulation -> loose tol
    np.testing.assert_allclose(np.asarray(out), np.asarray(ref), rtol=2e-2, atol=2e-2)
    print("KERNEL_OK")
</pallas_src>

<mosaic_0001>
module attributes {stable_mosaic.version = 11 : i64} {
  func.func @transition_kernel(%arg0: i32, %arg1: i32, %arg2: memref<1x4x32x4xbf16, #tpu.memory_space<vmem>>, %arg3: memref<1x4xf32, #tpu.memory_space<vmem>>, %arg4: memref<1x4xf32, #tpu.memory_space<vmem>>, %arg5: memref<4x2xbf16, #tpu.memory_space<vmem>>, %arg6: memref<1x32x2xf32, #tpu.memory_space<vmem>>) attributes {dimension_semantics = [#tpu.dimension_semantics<parallel>, #tpu.dimension_semantics<parallel>], iteration_bounds = array<i64: 2, 2>, scalar_prefetch = 0 : i64, scratch_operands = 0 : i64, tpu.core_type = #tpu.core_type<tc>, window_params = [{transform_indices = @transform_0, window_bounds = array<i64: 1, 4, 32, 4>}, {pipeline_mode = #tpu.pipeline_mode<synchronous>, transform_indices = @transform_1, window_bounds = array<i64: 1, 4>}, {pipeline_mode = #tpu.pipeline_mode<synchronous>, transform_indices = @transform_2, window_bounds = array<i64: 1, 4>}, {pipeline_mode = #tpu.pipeline_mode<synchronous>, transform_indices = @transform_3, window_bounds = array<i64: 4, 2>}, {transform_indices = @transform_4, window_bounds = array<i64: 1, 32, 2>}]} {
    %c0 = arith.constant 0 : index
    %c0_0 = arith.constant 0 : index
    %0 = vector.load %arg3[%c0, %c0_0] : memref<1x4xf32, #tpu.memory_space<vmem>>, vector<1x4xf32>
    %c0_1 = arith.constant 0 : index
    %c0_2 = arith.constant 0 : index
    %1 = vector.load %arg4[%c0_1, %c0_2] : memref<1x4xf32, #tpu.memory_space<vmem>>, vector<1x4xf32>
    %c0_3 = arith.constant 0 : index
    %c0_4 = arith.constant 0 : index
    %2 = vector.load %arg5[%c0_3, %c0_4] : memref<4x2xbf16, #tpu.memory_space<vmem>>, vector<4x2xbf16>
    %c0_5 = arith.constant 0 : index
    %c0_6 = arith.constant 0 : index
    %c0_7 = arith.constant 0 : index
    %c0_8 = arith.constant 0 : index
    %3 = vector.load %arg2[%c0_5, %c0_6, %c0_7, %c0_8] : memref<1x4x32x4xbf16, #tpu.memory_space<vmem>>, vector<1x1x32x4xbf16>
    %4 = vector.shape_cast %3 : vector<1x1x32x4xbf16> to vector<32x4xbf16>
    %5 = arith.extf %4 : vector<32x4xbf16> to vector<32x4xf32>
    %6 = vector.broadcast %0 : vector<1x4xf32> to vector<32x4xf32>
    %7 = arith.mulf %5, %6 : vector<32x4xf32>
    %8 = vector.broadcast %1 : vector<1x4xf32> to vector<32x4xf32>
    %9 = arith.addf %7, %8 : vector<32x4xf32>
    %cst = arith.constant 0.000000e+00 : f32
    %10 = vector.broadcast %cst : f32 to vector<32x4xf32>
    %11 = arith.maximumf %9, %10 : vector<32x4xf32>
    %c0_9 = arith.constant 0 : index
    %c1 = arith.constant 1 : index
    %c0_10 = arith.constant 0 : index
    %c0_11 = arith.constant 0 : index
    %12 = vector.load %arg2[%c0_9, %c1, %c0_10, %c0_11] : memref<1x4x32x4xbf16, #tpu.memory_space<vmem>>, vector<1x1x32x4xbf16>
    %13 = vector.shape_cast %12 : vector<1x1x32x4xbf16> to vector<32x4xbf16>
    %14 = arith.extf %13 : vector<32x4xbf16> to vector<32x4xf32>
    %15 = vector.broadcast %0 : vector<1x4xf32> to vector<32x4xf32>
    %16 = arith.mulf %14, %15 : vector<32x4xf32>
    %17 = vector.broadcast %1 : vector<1x4xf32> to vector<32x4xf32>
    %18 = arith.addf %16, %17 : vector<32x4xf32>
    %cst_12 = arith.constant 0.000000e+00 : f32
    %19 = vector.broadcast %cst_12 : f32 to vector<32x4xf32>
    %20 = arith.maximumf %18, %19 : vector<32x4xf32>
    %21 = arith.addf %11, %20 : vector<32x4xf32>
    %c0_13 = arith.constant 0 : index
    %c2 = arith.constant 2 : index
    %c0_14 = arith.constant 0 : index
    %c0_15 = arith.constant 0 : index
    %22 = vector.load %arg2[%c0_13, %c2, %c0_14, %c0_15] : memref<1x4x32x4xbf16, #tpu.memory_space<vmem>>, vector<1x1x32x4xbf16>
    %23 = vector.shape_cast %22 : vector<1x1x32x4xbf16> to vector<32x4xbf16>
    %24 = arith.extf %23 : vector<32x4xbf16> to vector<32x4xf32>
    %25 = vector.broadcast %0 : vector<1x4xf32> to vector<32x4xf32>
    %26 = arith.mulf %24, %25 : vector<32x4xf32>
    %27 = vector.broadcast %1 : vector<1x4xf32> to vector<32x4xf32>
    %28 = arith.addf %26, %27 : vector<32x4xf32>
    %cst_16 = arith.constant 0.000000e+00 : f32
    %29 = vector.broadcast %cst_16 : f32 to vector<32x4xf32>
    %30 = arith.maximumf %28, %29 : vector<32x4xf32>
    %31 = arith.addf %21, %30 : vector<32x4xf32>
    %c0_17 = arith.constant 0 : index
    %c3 = arith.constant 3 : index
    %c0_18 = arith.constant 0 : index
    %c0_19 = arith.constant 0 : index
    %32 = vector.load %arg2[%c0_17, %c3, %c0_18, %c0_19] : memref<1x4x32x4xbf16, #tpu.memory_space<vmem>>, vector<1x1x32x4xbf16>
    %33 = vector.shape_cast %32 : vector<1x1x32x4xbf16> to vector<32x4xbf16>
    %34 = arith.extf %33 : vector<32x4xbf16> to vector<32x4xf32>
    %35 = vector.broadcast %0 : vector<1x4xf32> to vector<32x4xf32>
    %36 = arith.mulf %34, %35 : vector<32x4xf32>
    %37 = vector.broadcast %1 : vector<1x4xf32> to vector<32x4xf32>
    %38 = arith.addf %36, %37 : vector<32x4xf32>
    %cst_20 = arith.constant 0.000000e+00 : f32
    %39 = vector.broadcast %cst_20 : f32 to vector<32x4xf32>
    %40 = arith.maximumf %38, %39 : vector<32x4xf32>
    %41 = arith.addf %31, %40 : vector<32x4xf32>
    %42 = arith.truncf %41 : vector<32x4xf32> to vector<32x4xbf16>
    %cst_21 = arith.constant dense<0.000000e+00> : vector<32x2xf32>
    %43 = tpu.matmul %42, %2, %cst_21 {dimension_numbers = #tpu.dot_dimension_numbers<[1], [0], [0], [1], [0, 0, 1, 1], [], []>} : vector<32x4xbf16>, vector<4x2xbf16>, vector<32x2xf32> -> vector<32x2xf32>
    %c0_22 = arith.constant 0 : index
    %c0_23 = arith.constant 0 : index
    %c0_24 = arith.constant 0 : index
    %44 = vector.load %arg6[%c0_22, %c0_23, %c0_24] : memref<1x32x2xf32, #tpu.memory_space<vmem>>, vector<1x32x2xf32>
    %45 = vector.shape_cast %44 : vector<1x32x2xf32> to vector<32x2xf32>
    %46 = vector.shape_cast %43 : vector<32x2xf32> to vector<1x32x2xf32>
    tpu.vector_store %arg6[%c0_22, %c0_23, %c0_24], %46 {strides = array<i32>} : memref<1x32x2xf32, #tpu.memory_space<vmem>>, vector<1x32x2xf32>,
    return
  }
  func.func @transform_0(%arg0: i32, %arg1: i32) -> (i32, i32, i32, i32) {
    %c0_i32 = arith.constant 0 : i32
    %c0_i32_0 = arith.constant 0 : i32
    %c0_i32_1 = arith.constant 0 : i32
    return %arg0, %c0_i32, %arg1, %c0_i32_0 : i32, i32, i32, i32
  }
  func.func @transform_1(%arg0: i32, %arg1: i32) -> (i32, i32) {
    %c0_i32 = arith.constant 0 : i32
    %c0_i32_0 = arith.constant 0 : i32
    %c0_i32_1 = arith.constant 0 : i32
    return %c0_i32, %c0_i32_0 : i32, i32
  }
  func.func @transform_2(%arg0: i32, %arg1: i32) -> (i32, i32) {
    %c0_i32 = arith.constant 0 : i32
    %c0_i32_0 = arith.constant 0 : i32
    %c0_i32_1 = arith.constant 0 : i32
    return %c0_i32, %c0_i32_0 : i32, i32
  }
  func.func @transform_3(%arg0: i32, %arg1: i32) -> (i32, i32) {
    %c0_i32 = arith.constant 0 : i32
    %c0_i32_0 = arith.constant 0 : i32
    %c0_i32_1 = arith.constant 0 : i32
    return %c0_i32, %c0_i32_0 : i32, i32
  }
  func.func @transform_4(%arg0: i32, %arg1: i32) -> (i32, i32, i32) {
    %c0_i32 = arith.constant 0 : i32
    %c0_i32_0 = arith.constant 0 : i32
    return %arg0, %arg1, %c0_i32 : i32, i32, i32
  }
}

</mosaic_0001>

<bundles_post_ra>
// kernel: tpu_custom_call.1
= control target key start
LH: loop header
LB: loop body
LE: loop exit
PB: predicated region body
PF: predicated region fallthrough
CT: control target
= control target key end

     0   :  { %9 = vsyncpa [#allocation3], 0  ;;  %s1373_s0 = inlined_call_operand.hbm [shape: bf16[2,4,64,4], index: 0, kind: input, shape index: {}]   ;;  %s1374_s1 = inlined_call_operand.hbm [shape: f32[1,4], index: 1, kind: input, shape index: {}]   ;;  %s1375_s2 = inlined_call_operand.hbm [shape: f32[1,4], index: 2, kind: input, shape index: {}]   ;;  %s1376_s3 = inlined_call_operand.hbm [shape: bf16[4,2], index: 3, kind: input, shape index: {}]   ;;  %s1377_s4 = inlined_call_operand.hbm [shape: f32[2,64,2], index: 4, kind: output, shape index: {}]  }
   0x1   :  { %11 = vsyncpa [#allocation3 + $0x1], 0 }
   0x2   :  { %12 = vsyncpa [#allocation6], 0 }
   0x3   :  { %13 = vsyncpa [#allocation9], 0 }
   0x4   :  { %14 = vsyncpa [#allocation4], 0 }
   0x5   :  { %16 = vsyncpa [#allocation4 + $0x1], 0  ;;  %s1048_s15 = smov 0   ;;  %s1050_s16 = smov 0  }
   0x6   :  { %s1052_s17 = smov 0   ;;  %s1054_s18 = smov 0  }
   0x7   :  { %s1056_s19 = smov 0   ;;  %s1058_s20 = smov 0  }
   0x8   :  { %s1060_s21 = smov 0   ;;  %s1062_s22 = smov 0  }
   0x9 LB: > { %1388 = sst [smem:[#allocation18_spill]] %s982_s15  ;;  %s612_s23 = sadd.s32 4294967295, %s1010_s22   ;;  %s1010_s22 = sphi %s1062_s22, %s22_s22   ;;  %s1006_s21 = sphi %s1060_s21, %s1418_s21   ;;  %s1002_s20 = sphi %s1058_s20, %s1417_s20   ;;  %s998_s19 = sphi %s1056_s19, %s1416_s19   ;;  %s994_s18 = sphi %s1054_s18, %s1415_s18   ;;  %s990_s17 = sphi %s1052_s17, %s1414_s17   ;;  %s986_s16 = sphi %s1050_s16, %s1413_s16   ;;  %s982_s15 = sphi %s1048_s15, %s1412_s15  }
   0xa   : > { %s613_s24 = sadd.s32 4294967294, %s1010_s22   ;;  %s31_s25 = sadd.s32 1, %s1002_s20 }
   0xb   : > { %s34_s26 = sadd.s32 1, %s1006_s21  ;;  %p32_p0 = scmp.ge.s32.totalorder %s31_s25, 2 }
   0xc   : > { %s43_s27 = sadd.s32 1, %s990_s17  ;;  %p50_p1 = scmp.ne.s32.totalorder %s990_s17, %s986_s16 }
   0xd   : > { %p51_p2 = scmp.eq.s32.totalorder %s1010_s22, 0  ;;  %s1420_s25 = smov (%p32_p0, %s31_s25), 0 }
   0xe   : > { %1389 = sst [smem:[#allocation19_spill]] %s1420_s25  ;;  %s1422_s26 = smov (!%p32_p0, %s34_s26), %s1006_s21 }
   0xf   : > { %s39_s28 = ssub.s32 %s1002_s20, %s1420_s25  ;;  %p1101_p3 = por %p51_p2, %p50_p1 }
  0x10   : > { %p36_p4 = scmp.ge.s32.totalorder %s1422_s26, 2  ;;  %p56_p5 = scmp.ne.s32.totalorder %s986_s16, %s982_s15 }
  0x11   : > { %s1390_s29 = scalar_select %p1101_p3, 1, 0 }
  0x12   : > { %p1107_p6 = scmp.eq.s32.totalorder %s612_s23, 0  ;;  %p145_p7 = scmp.eq.s32.totalorder %s612_s23, 3 }
  0x13   : > { %s1424_s26 = smov (%p36_p4, %s1422_s26), 0  ;;  %p151_p10 = scmp.eq.s32.totalorder %s613_s24, 3 }
  0x14   : > { %s1391_s30 = scalar_select %p1107_p6, 1, 0 }
  0x15   : > { %1392 = sst [smem:[#allocation20_spill]] %s1424_s26  ;;  %p1115_p8 = por %p1107_p6, %p56_p5 }
  0x16   : > { %p1119_p9 = por %p145_p7, %p50_p1  ;;  %s38_s7 = ssub.s32 %s1006_s21, %s1424_s26 }
  0x17   : > { %s1393_s5 = scalar_select %p1115_p8, 1, 0 }
  0x18   : > { %s1394_s6 = scalar_select %p1119_p9, 1, 0 }
  0x19   : > { %s40_s8 = sor.u32 %s39_s28, %s38_s7  ;;  %p614_p11 = scmp.ge.s32.totalorder %s1010_s22, 1 }
  0x1a   : > { %p41_p12 = scmp.eq.s32.totalorder %s40_s8, 0  ;;  %p1126_p13 = por %p151_p10, %p56_p5 }
  0x1b   : > { %p158_p0 = scmp.lt.s32.totalorder %s1010_s22, 5  ;;  %s1012_s12 = smov [#allocation5]  }
  0x1c   : > { %s1395_s9 = scalar_select %p1126_p13, 1, 0 }
  0x1d   : > { %s1132_s10 = scalar_select %p41_p12, %s990_s17, %s43_s27  }
  0x1e   : > { %1396 = sst [smem:[#allocation21_spill]] %s1395_s9  ;;  %p1134_p2 = pnand %p614_p11, %p158_p0 }
  0x1f   : > { %1397 = sst [smem:[#allocation22_spill]] %s1132_s10  ;;  %s171_s13 = sshll.u32 %s1012_s12, 4  ;;  %s172_s13 = int_to_ptr.vmem [resolvable:$true] %s171_s13 }
  0x20   : > { %s1398_s11 = scalar_select %p1134_p2, 1, 0 }
  0x21   : > { %p725_p1 = pneg %p1134_p2  ;;  %s1013_s14 = smov [#allocation7]  }
  0x22   : > { %s182_s23 = sshll.u32 %s1013_s14, 4  ;;  %s1014_s27 = smov [#allocation8]   ;;  %s1146_s23 = int_to_ptr.vmem [resolvable:$true] %s182_s23 }
  0x23   : > { %p1142_p4 = pnand %p725_p1, %p1107_p6  ;;  %s193_s28 = sshll.u32 %s1014_s27, 4  ;;  %s1148_s28 = int_to_ptr.vmem [resolvable:$true] %s193_s28 }
  0x24   : > { %s820_s12 = scalar_lea.hbm %s1374_s1, 16 }
  0x25   : > { %p821_p5 = scmp.ne.s32.totalorder %s1374_s1, %s820_s12  ;;  %p1158_p7 = pneg %p1142_p4 }
  0x26   : > { %p827_p12 = scmp.lt.u32.totalorder %s820_s12, %s1374_s1 }
  0x27   : > { %p823_p10 = pnand %p1158_p7, %p821_p5 }
  0x29   : > { %p824_p11 = pneg %p823_p10 }
  0x2b   : > { %p829_p0 = pnand %p827_p12, %p824_p11 }
  0x2d   : > { %832 = shalt.err (!%p829_p0)
}
  0x2e   : > { %s833_s7 = scalar_lea.vmem %s172_s13, 16  ;;  %s840_s25 = scalar_lea.vmem %s172_s13, 32 }
  0x2f   : > { %p834_p1 = scmp.ne.s32.totalorder %s172_s13, %s833_s7  ;;  %p841_p6 = scmp.lt.s32.totalorder %s172_s13, %s172_s13 }
  0x30   : > { %p842_p8 = scmp.lt.s32.totalorder %s840_s25, %s833_s7 }
  0x31   : > { %p836_p13 = pnand %p834_p1, %p1158_p7 }
  0x32   : > { %p843_p2 = por %p842_p8, %p841_p6 }
  0x33   : > { %p837_p9 = pneg %p836_p13 }
  0x35   : > { %p844_p3 = pnand %p843_p2, %p837_p9 }
  0x37   : > { %847 = shalt.err (!%p844_p3)
}
  0x38   : > { %728 = dma.hbm_to_vmem [thread:$0]  (!%p1142_p4), %s1374_s1, 16, %s172_s13, [#allocation6]  }
  0x39   : > { %s848_s27 = scalar_lea.hbm %s1375_s2, 16 }
  0x3a   : > { %p849_p13 = scmp.ne.s32.totalorder %s1375_s2, %s848_s27  ;;  %p855_p3 = scmp.lt.u32.totalorder %s848_s27, %s1375_s2 }
  0x3c   : > { %p851_p5 = pnand %p849_p13, %p1158_p7 }
  0x3e   : > { %p852_p6 = pneg %p851_p5 }
  0x40   : > { %p857_p8 = pnand %p855_p3, %p852_p6 }
  0x42   : > { %860 = shalt.err (!%p857_p8)
}
  0x43   : > { %s861_s13 = scalar_lea.vmem %s1146_s23, 16  ;;  %s868_s15 = scalar_lea.vmem %s1146_s23, 32 }
  0x44   : > { %p862_p9 = scmp.ne.s32.totalorder %s1146_s23, %s861_s13  ;;  %p869_p11 = scmp.lt.s32.totalorder %s1146_s23, %s1146_s23 }
  0x45   : > { %p870_p12 = scmp.lt.s32.totalorder %s868_s15, %s861_s13 }
  0x46   : > { %p864_p2 = pnand %p862_p9, %p1158_p7 }
  0x47   : > { %p871_p0 = por %p870_p12, %p869_p11 }
  0x48   : > { %p865_p10 = pneg %p864_p2 }
  0x4a   : > { %p872_p1 = pnand %p871_p0, %p865_p10 }
  0x4c   : > { %875 = shalt.err (!%p872_p1)
}
  0x4d   : > { %731 = dma.hbm_to_vmem [thread:$0]  (!%p1142_p4), %s1375_s2, 16, %s1146_s23, [#allocation6]  }
  0x4e   : > { %s876_s12 = scalar_lea.hbm %s1376_s3, 32 }
  0x4f   : > { %p877_p13 = scmp.ne.s32.totalorder %s1376_s3, %s876_s12  ;;  %p883_p3 = scmp.lt.u32.totalorder %s876_s12, %s1376_s3 }
  0x51   : > { %p879_p5 = pnand %p877_p13, %p1158_p7 }
  0x53   : > { %p880_p6 = pneg %p879_p5 }
  0x55   : > { %p885_p8 = pnand %p883_p3, %p880_p6 }
  0x57   : > { %888 = shalt.err (!%p885_p8)
}
  0x58   : > { %s889_s23 = scalar_lea.vmem %s1148_s28, 32  ;;  %p897_p11 = scmp.lt.s32.totalorder %s1148_s28, %s1148_s28 }
  0x59   : > { %p890_p9 = scmp.ne.s32.totalorder %s1148_s28, %s889_s23  ;;  %p898_p12 = scmp.lt.s32.totalorder %s889_s23, %s889_s23 }
  0x5b   : > { %p892_p2 = pnand %p890_p9, %p1158_p7  ;;  %p899_p0 = por %p898_p12, %p897_p11 }
  0x5d   : > { %p893_p10 = pneg %p892_p2 }
  0x5f   : > { %p900_p1 = pnand %p899_p0, %p893_p10 }
  0x61   : > { %903 = shalt.err (!%p900_p1)
}
  0x62   : > { %734 = dma.hbm_to_vmem [thread:$0]  (!%p1142_p4), %s1376_s3, 32, %s1148_s28, [#allocation9]  }
  0x63   : > { %p618_p13 = scmp.ge.s32.totalorder %s1010_s22, 4 }
  0x65   : > { %200 = sbr.rel (%p618_p13) target bundleno = 125 (0x7d), region = 28 }
  0x6c   : > { %s204_s14 = sand.u32 1, %s990_s17   ;;  %s620_s26 = sshll.u32 %s1002_s20, 2 }
  0x6d   : > { %s619_s8 = sshll.u32 %s204_s14, 6  ;;  %s621_s24 = sshll.u32 %s1006_s21, 5 }
  0x6e   : > { %s214_s10 = sadd.s32 %s621_s24, %s620_s26  ;;  %s208_s12 = scalar_lea.vmem [#allocation2], %s619_s8 }
  0x6f   : > { %s229_s28 = sshll.u32 %s208_s12, 4  ;;  %s622_s27 = sshll.u32 %s214_s10, 6  ;;  %s230_s28 = int_to_ptr.vmem [resolvable:$true] %s229_s28 }
  0x70   : > { %p1401_p4 = scmp.ne.s32.totalorder %s1390_s29, 0  ;;  %s1015_s25 = smov 512  }
  0x71   : > { %s1016_s23 = smov 256   ;;  %s1017_s15 = smov 4  }
  0x72   : > { %s708_s7 = scalar_select %p1401_p4, [#allocation0], [#allocation13] }
  0x73   : > { %709 = sst [smem:[#allocation12]] (%p1401_p4), %s1015_s25  ;;  %s1018_s9 = smov 64  }
  0x74   : > { %s221_s13 = sld [smem:[%s708_s7]]   ;;  %s216_s24 = scalar_lea.hbm %s1373_s0, %s622_s27 }
  0x75   : > { %710 = sst [smem:[#allocation12 + $0x1]] (%p1401_p4), %s1016_s23  ;;  %s205_s7 = scalar_lea.sflag [#allocation3], %s204_s14 }
  0x76   : > { %711 = sst [smem:[#allocation12 + $0x2]] (%p1401_p4), %s1017_s15  ;;  %s1019_s25 = smov [#allocation11]  }
  0x77   : > { %712 = sst [smem:[#allocation12 + $0x3]] (%p1401_p4), %s1018_s9 }
  0x78   : > { %713 = sst [smem:[#allocation12 + $0x4]] (%p1401_p4), %s1018_s9 }
  0x79   : > { %714 = sst [smem:[#allocation12 + $0x5]] (%p1401_p4), %s1017_s15 }
  0x7a   : > { %s623_s10 = sshll.u32 %s221_s13, 26 }
  0x7b   : > { %s624_s12 = sadd.s32 134217728, %s623_s10 }
  0x7c   : > { %715 = dma.general (%p1401_p4), %s216_s24, 1024, %s230_s28, %s205_s7, %s1019_s25, [#allocation12], %s624_s12, 0  }
  0x7d PF: > { %p1402_p7 = scmp.ne.s32.totalorder %s1398_s11, 0 }
  0x7e   : > { %s1247_s23 = sand.u32 (!%p1402_p7), 1, %s986_s16   ;;  %p1403_p5 = scmp.ne.s32.totalorder (!%p1402_p7), %s1393_s5, 0 }
  0x7f   : > { %254 = sbr.rel (%p1402_p7) target bundleno = 400 (0x190), region = 36  ;;  %s626_s27 = sshll.u32 (!%p1402_p7), %s1247_s23, 6 }
  0x80   : > { %s257_s9 = scalar_lea.sflag (!%p1402_p7), [#allocation3], %s1247_s23  ;;  %s1251_s26 = scalar_lea.vmem (!%p1402_p7), [#allocation2], %s626_s27 }
  0x86   : > { %965 = dma.done.wait (%p1403_p5), %s257_s9, 1024  }
  0x87   : > { %967 = vsyncadd (%p1403_p5), %s257_s9, 4294966272  ;;  %p1404_p6 = scmp.ne.s32.totalorder %s1391_s30, 0 }
  0x89   : > { %969 = dma.done.wait (%p1404_p6), [#allocation6], 32  }
  0x8a   : > { %971 = vsyncadd (%p1404_p6), [#allocation6], 4294967264 }
  0x8b   : > { %973 = dma.done.wait (%p1404_p6), [#allocation9], 32  }
  0x8c   : > { %975 = vsyncadd (%p1404_p6), [#allocation9], 4294967264  ;;  %vm419_vm0 = vcmask 1041408   ;;  %v302_v0 = vld [vmem:[#allocation8] sm:$0x3]  ;;  %v686_v4 = vld [vmem:[%s1251_s26 + $0x10] sm:$0xff]  }
  0x8d   : > { %v1265_v1 = vld [vmem:[#allocation5] ss:$0 sm:$0xff]  ;;  %701 = vmatprep.subr.msk.bf16.mxu0 %vm419_vm0, %v302_v0  ;;  %v421_v2 = vsel %vm419_vm0, %v302_v0, 0  ;;  %v663_v8 = vunpack.c.l.bf16 %v686_v4  ;;  %v664_v9 = vunpack.c.h.bf16 %v686_v4  ;;  %v690_v10 = vld [vmem:[%s1251_s26 + $0x30] sm:$0xff]   ;;  %v1271_v11 = vld [vmem:[#allocation7] ss:$0 sm:$0xff] }
  0x8e   : > { %v654_v3 = vld [vmem:[%s1251_s26] sm:$0xff]   ;;  %696 = vmatpush3.bf16.msra.mxu0 %v421_v2  ;;  %v679_v14 = vunpack.c.l.bf16 %v690_v10  ;;  %v680_v15 = vunpack.c.h.bf16 %v690_v10  ;;  %vm412_vm1 = vcmask 31744   ;;  %v685_v32 = vld [vmem:[%s1251_s26 + $0x8] sm:$0xff]   ;;  %v687_v37 = vld [vmem:[%s1251_s26 + $0x18] sm:$0xff]   ;;  %s648_s29 = sshll.u32 %s994_s18, 2  ;;  %s649_s30 = sshll.u32 %s998_s19, 3 }
  0x8f   : > { %v688_v5 = vld [vmem:[%s1251_s26 + $0x20] sm:$0xff]   ;;  %v655_v6 = vunpack.c.l.bf16 %v654_v3  ;;  %v656_v7 = vunpack.c.h.bf16 %v654_v3  ;;  %v344_v18 = vmul.f32 %v663_v8, %v1265_v1  ;;  %v345_v19 = vmul.f32 %v664_v9, %v1265_v1  ;;  %v689_v38 = vld [vmem:[%s1251_s26 + $0x28] sm:$0xff]   ;;  %v691_v59 = vld [vmem:[%s1251_s26 + $0x38] sm:$0xff]   ;;  %s630_s5 = sshll.u32 %s1247_s23, 5  ;;  %s490_s11 = sadd.s32 %s649_s30, %s648_s29 }
  0x90   : > { %v671_v12 = vunpack.c.l.bf16 %v688_v5  ;;  %v672_v13 = vunpack.c.h.bf16 %v688_v5  ;;  %v394_v22 = vmul.f32 %v679_v14, %v1265_v1  ;;  %v395_v23 = vmul.f32 %v680_v15, %v1265_v1  ;;  %s296_s14 = scalar_lea.vmem [#allocation10], %s630_s5  ;;  %s650_s13 = sshll.u32 %s490_s11, 7 }
  0x91   : > { %v317_v16 = vmul.f32 %v655_v6, %v1265_v1  ;;  %v318_v17 = vmul.f32 %v656_v7, %v1265_v1  ;;  %v348_v26 = vadd.f32 %v1271_v11, %v344_v18  ;;  %v349_v27 = vadd.f32 %v1271_v11, %v345_v19  ;;  %s493_s28 = sshll.u32 %s296_s14, 4  ;;  %s1319_s18 = scalar_lea.hbm %s1377_s4, %s650_s13  ;;  %s1314_s28 = int_to_ptr.vmem [resolvable:$true] %s493_s28 }
  0x92   : > { %v369_v20 = vmul.f32 %v671_v12, %v1265_v1  ;;  %v370_v21 = vmul.f32 %v672_v13, %v1265_v1  ;;  %v398_v30 = vadd.f32 %v1271_v11, %v394_v22  ;;  %v399_v31 = vadd.f32 %v1271_v11, %v395_v23  ;;  %s478_s19 = scalar_lea.sflag [#allocation4], %s1247_s23  ;;  %s904_s24 = scalar_lea.vmem %s1314_s28, 512 }
  0x93   : > { %v327_v24 = vadd.f32 %v1271_v11, %v317_v16  ;;  %v328_v25 = vadd.f32 %v1271_v11, %v318_v17  ;;  %v352_v35 = vmax.f32 %v348_v26, 0.0  ;;  %v353_v36 = vmax.f32 %v349_v27, 0.0  ;;  %p905_p3 = scmp.ne.s32.totalorder %s1314_s28, %s904_s24  ;;  %p1405_p8 = scmp.ne.s32.totalorder %s1394_s6, 0 }
  0x94   : > { %v373_v28 = vadd.f32 %v1271_v11, %v369_v20  ;;  %v374_v29 = vadd.f32 %v1271_v11, %v370_v21  ;;  %v402_v41 = vmax.f32 %v398_v30, 0.0  ;;  %v403_v42 = vmax.f32 %v399_v31, 0.0  ;;  %s1020_s10 = smov [#allocation10]  }
  0x95   : > { %v331_v33 = vmax.f32 %v327_v24, 0.0  ;;  %v332_v34 = vmax.f32 %v328_v25, 0.0  ;;  %v659_v45 = vunpack.c.l.bf16 %v685_v32  ;;  %v660_v46 = vunpack.c.h.bf16 %v685_v32  ;;  %p906_p9 = pnand %p905_p3, %p1405_p8  ;;  %s908_s12 = sshll.u32 %s1020_s10, 4  ;;  %s909_s12 = int_to_ptr.vmem [resolvable:$false] %s908_s12 }
  0x96   : > { %v377_v39 = vmax.f32 %v373_v28, 0.0  ;;  %v378_v40 = vmax.f32 %v374_v29, 0.0  ;;  %v667_v47 = vunpack.c.l.bf16 %v687_v37  ;;  %v668_v48 = vunpack.c.h.bf16 %v687_v37  ;;  %s910_s7 = scalar_lea.vmem %s909_s12, 1024  ;;  %p911_p10 = scmp.lt.s32.totalorder %s1314_s28, %s909_s12 }
  0x97   : > { %v356_v43 = vadd.f32 %v352_v35, %v331_v33  ;;  %v357_v44 = vadd.f32 %v353_v36, %v332_v34  ;;  %v675_v49 = vunpack.c.l.bf16 %v689_v38  ;;  %v676_v50 = vunpack.c.h.bf16 %v689_v38  ;;  %p907_p2 = pneg %p906_p9  ;;  %p912_p11 = scmp.lt.s32.totalorder %s910_s7, %s904_s24 }
  0x98   : > { %v319_v53 = vmul.f32 %v659_v45, %v1265_v1  ;;  %v320_v54 = vmul.f32 %v660_v46, %v1265_v1  ;;  %v346_v55 = vmul.f32 %v667_v47, %v1265_v1  ;;  %v347_v56 = vmul.f32 %v668_v48, %v1265_v1 }
  0x99   : > { %v381_v51 = vadd.f32 %v377_v39, %v356_v43  ;;  %v382_v52 = vadd.f32 %v378_v40, %v357_v44  ;;  %v371_v57 = vmul.f32 %v675_v49, %v1265_v1  ;;  %v372_v58 = vmul.f32 %v676_v50, %v1265_v1  ;;  %p913_p12 = por %p912_p11, %p911_p10 }
  0x9a   : > { %v329_v62 = vadd.f32 %v1271_v11, %v319_v53  ;;  %v330_v63 = vadd.f32 %v1271_v11, %v320_v54  ;;  %v350_v0 = vadd.f32 %v1271_v11, %v346_v55  ;;  %v351_v2 = vadd.f32 %v1271_v11, %v347_v56 }
  0x9b   : > { %v406_v60 = vadd.f32 %v402_v41, %v381_v51  ;;  %v407_v61 = vadd.f32 %v403_v42, %v382_v52  ;;  %v375_v3 = vadd.f32 %v1271_v11, %v371_v57  ;;  %v376_v4 = vadd.f32 %v1271_v11, %v372_v58  ;;  %p914_p0 = pnand %p913_p12, %p907_p2 }
  0x9c   : > { %v333_v6 = vmax.f32 %v329_v62, 0.0  ;;  %v334_v7 = vmax.f32 %v330_v63, 0.0  ;;  %v683_v8 = vunpack.c.l.bf16 %v691_v59  ;;  %v354_v9 = vmax.f32 %v350_v0, 0.0 }
  0x9d   : > { %v410_v5 = vpack.c.bf16 %v407_v61, %v406_v60  ;;  %v355_v10 = vmax.f32 %v351_v2, 0.0  ;;  %v379_v12 = vmax.f32 %v375_v3, 0.0  ;;  %v380_v13 = vmax.f32 %v376_v4, 0.0 }
  0x9e   : > { %v684_v14 = vunpack.c.h.bf16 %v691_v59  ;;  %v396_v15 = vmul.f32 %v683_v8, %v1265_v1  ;;  %v358_v16 = vadd.f32 %v354_v9, %v333_v6  ;;  %vm472_vm2 = vcmask 15360  }
  0x9f   : > { %697 = vmatprep.mubr.msk.bf16.mxu0 %vm412_vm1, %v410_v5  ;;  %v359_v17 = vadd.f32 %v355_v10, %v334_v7 }
  0xa0   : > { %v397_v18 = vmul.f32 %v684_v14, %v1265_v1  ;;  %v400_v19 = vadd.f32 %v1271_v11, %v396_v15  ;;  %v383_v20 = vadd.f32 %v379_v12, %v358_v16 }
  0xa1   : > { %v384_v21 = vadd.f32 %v380_v13, %v359_v17 }
  0xa2   : > { %v401_v22 = vadd.f32 %v1271_v11, %v397_v18  ;;  %v404_v23 = vmax.f32 %v400_v19, 0.0 }
  0xa4   : > { %v405_v24 = vmax.f32 %v401_v22, 0.0  ;;  %v408_v25 = vadd.f32 %v404_v23, %v383_v20 }
  0xa6   : > { %v409_v26 = vadd.f32 %v405_v24, %v384_v21 }
  0xa8   : > { %v411_v27 = vpack.c.bf16 %v409_v26, %v408_v25 }
  0xaa   : > { %698 = vmatmul.mubr.msk.bf16.vlgmr.msra.gmra.mrb[0].mxu0 %vm412_vm1, %v411_v27 }
 0x17d   : > { %v699_v1 = vpop.f32.mrb[0].mxu0 }
 0x17e   : > { %475 = vst.msk [vmem:[%s296_s14 + $0x10] sm:$0xff] %vm472_vm2, %v699_v1  ;;  %v457_v11 = vpop.f32.mrb[1].mxu0 }
 0x17f   : > { %473 = vst.msk [vmem:[%s296_s14] sm:$0xff] %vm472_vm2, %v457_v11  ;;  %v700_v28 = vpop.f32.mrb[2].mxu0 }
 0x180   : > { %476 = vst.msk [vmem:[%s296_s14 + $0x18] sm:$0xff] %vm472_vm2, %v700_v28  ;;  %v460_v29 = vpop.f32.mrb[3].mxu0 }
 0x181   : > { %474 = vst.msk [vmem:[%s296_s14 + $0x8] sm:$0xff] %vm472_vm2, %v460_v29 }
 0x182   : > { %917 = shalt.err (!%p914_p0)
}
 0x183   : > { %s918_s25 = scalar_lea.hbm %s1319_s18, 512  ;;  %s922_s26 = scalar_lea.hbm %s1377_s4, 2048 }
 0x184   : > { %p919_p1 = scmp.ne.s32.totalorder %s1319_s18, %s918_s25  ;;  %p923_p7 = scmp.lt.u32.totalorder %s1319_s18, %s1377_s4 }
 0x185   : > { %p924_p5 = scmp.lt.u32.totalorder %s922_s26, %s918_s25  ;;  %p926_p3 = scmp.lt.u32.totalorder %s918_s25, %s1319_s18 }
 0x186   : > { %p920_p13 = pnand %p919_p1, %p1405_p8 }
 0x187   : > { %p925_p6 = por %p924_p5, %p923_p7 }
 0x188   : > { %p921_p4 = pneg %p920_p13 }
 0x189   : > { %p927_p9 = por %p926_p3, %p925_p6 }
 0x18b   : > { %p928_p2 = pnand %p927_p9, %p921_p4 }
 0x18d   : > { %931 = shalt.err (!%p928_p2)
}
 0x18e   : > { %s1021_s5 = smov 128   ;;  %s1022_s11 = smov 8  }
 0x18f   : > { %723 = dma.vmem_to_hbm [thread:$0]  (%p1405_p8), %s1314_s28, 512, %s1319_s18, %s478_s19, %s1021_s5, %s1021_s5, %s1022_s11  }
 0x190 PF: > { %s1406_s14 = sld [smem:[#allocation18_spill]]  ;;  %s1407_s13 = sld [smem:[#allocation21_spill]] }
 0x191   : > { %p745_p10 = scmp.ge.s32.totalorder %s1010_s22, 2 }
 0x196   : > { %s508_s15 = sand.u32 1, %s1406_s14   ;;  %p1408_p11 = scmp.ne.s32.totalorder %s1407_s13, 0 }
 0x197   : > { %s509_s8 = scalar_lea.sflag [#allocation4], %s508_s15 }
 0x198   : > { %p736_p12 = pnand %p745_p10, %p1408_p11 }
 0x19a   : > { %977 = dma.done.wait (!%p736_p12), %s509_s8, 512  }
 0x19b   : > { %979 = vsyncadd (!%p736_p12), %s509_s8, 4294966784  ;;  %s22_s22 = sadd.s32 1, %s1010_s22   ;;  %s1409_s24 = sld [smem:[#allocation22_spill]] }
 0x19c   : > { %p19_p0 = scmp.ge.s32.totalorder %s22_s22, 6   ;;  %s1410_s6 = sld [smem:[#allocation19_spill]] }
 0x19d   : > { %s1411_s23 = sld [smem:[#allocation20_spill]]  ;;  %s1412_s15 = smov %s986_s16 }
 0x19e   : > { %s1413_s16 = smov %s990_s17  ;;  %s1415_s18 = smov %s1002_s20 }
 0x19f   : > { %s1416_s19 = smov %s1006_s21  ;;  %21 = sbr.rel (!%p19_p0) target bundleno = 9 (0x9), region = 101 }
 0x1a1   : > { %s1414_s17 = smov %s1409_s24 }
 0x1a2   : > { %s1417_s20 = smov %s1410_s6 }
 0x1a3   : > { %s1418_s21 = smov %s1411_s23 }
 0x1a6   :  { %514 = vsyncpa [#allocation3], 1 }
 0x1a7   :  { %516 = vsyncpa [#allocation3 + $0x1], 1 }
 0x1a8   :  { %517 = vsyncpa [#allocation6], 1 }
 0x1a9   :  { %518 = vsyncpa [#allocation9], 1 }
 0x1aa   :  { %519 = vsyncpa [#allocation4], 1 }
 0x1ab   :  { %521 = vsyncpa [#allocation4 + $0x1], 1 }

</bundles_post_ra>
